<compile_context>
chip_gen: v7x
topology: tpu7x:2x2x1
jax: 0.10.0
libtpu: 0.0.40
codegen_flags: <defaults>
</compile_context>

<pallas_src>
import jax
import jax.numpy as jnp
from jax.experimental import pallas as pl
from jax.experimental.pallas import tpu as pltpu

LANE = 128
FUSE_VMEM_BUDGET = 24 * 1024 * 1024      # fused two-layer path: everything resident
X_RESIDENT_BUDGET = 24 * 1024 * 1024     # tiled path: keep X/H resident if <= this (x2 buffered)
VMEM_LIMIT_BYTES = 48 * 1024 * 1024      # under v7x's 64 MiB/TC physical VMEM


def _round_up(v, m):
    return (v + m - 1) // m * m


def _pad2(x, rows, cols):
    return jnp.pad(x, ((0, rows - x.shape[0]), (0, cols - x.shape[1])))


# ---------------------------------------------------------------------------
# Fused two-layer kernel (small/medium graphs): one launch, H stays on-chip.
# ---------------------------------------------------------------------------
def _fused_two_layer_kernel(a_ref, x_ref, w1_ref, b1_ref, w2_ref, b2_ref,
                            logits_ref, out_ref):
    # Layer 1: logits = (A @ X) @ W1 + b1   (bf16 MXU inputs, f32 accumulation)
    ax = jnp.dot(a_ref[...], x_ref[...], preferred_element_type=jnp.float32)
    logits = jnp.dot(ax.astype(jnp.bfloat16), w1_ref[...],
                     preferred_element_type=jnp.float32) + b1_ref[...]
    logits_ref[...] = logits
    # Layer 2: out = (A @ relu(logits)) @ W2 + b2
    h = jnp.maximum(logits, 0.0).astype(jnp.bfloat16)
    ah = jnp.dot(a_ref[...], h, preferred_element_type=jnp.float32)
    out_ref[...] = jnp.dot(ah.astype(jnp.bfloat16), w2_ref[...],
                           preferred_element_type=jnp.float32) + b2_ref[...]


def _gcn_fused(a_p, x_p, w1_p, b1_p, w2_p, b2_p):
    n_pad = a_p.shape[0]
    e_pad = w1_p.shape[1]
    c_pad = w2_p.shape[1]
    return pl.pallas_call(
        _fused_two_layer_kernel,
        out_shape=(jax.ShapeDtypeStruct((n_pad, e_pad), jnp.float32),
                   jax.ShapeDtypeStruct((n_pad, c_pad), jnp.float32)),
        compiler_params=pltpu.CompilerParams(vmem_limit_bytes=VMEM_LIMIT_BYTES),
    )(a_p, x_p, w1_p, b1_p, w2_p, b2_p)


# ---------------------------------------------------------------------------
# Tiled single GCN layer (large graphs):  Y = (A_hat @ X) @ W + b  [opt. H=relu(Y)]
# Grid = (row tiles, k tiles over the A_hat contraction axis); row axis parallel,
# k axis is an "arbitrary" reduction carried in an f32 VMEM accumulator.
# ---------------------------------------------------------------------------
def _make_layer_kernel(emit_relu, x_resident, tk):
    def body(a_ref, x_ref, w_ref, b_ref, y_ref, h_ref, acc_ref):
        k = pl.program_id(1)

        @pl.when(k == 0)
        def _():
            acc_ref[...] = jnp.zeros_like(acc_ref)

        if x_resident:
            # X / H lives fully in VMEM; slice the current k-strip locally
            # (no repeated HBM fetch per row tile).
            start = pl.multiple_of(k * tk, tk)
            x_blk = x_ref[pl.ds(start, tk), :]
        else:
            x_blk = x_ref[...]

        # bf16 x bf16 MXU matmul over the node-contraction axis, f32 accumulate.
        acc_ref[...] += jnp.dot(a_ref[...], x_blk,
                                preferred_element_type=jnp.float32)

        @pl.when(k == pl.num_programs(1) - 1)
        def _():
            # Single-pass bf16 MXU product for the feature transform as well.
            y = jnp.dot(acc_ref[...].astype(jnp.bfloat16), w_ref[...],
                        preferred_element_type=jnp.float32) + b_ref[...]
            y_ref[...] = y
            if h_ref is not None:
                h_ref[...] = jnp.maximum(y, 0.0).astype(h_ref.dtype)

    if emit_relu:
        def kernel(a_ref, x_ref, w_ref, b_ref, y_ref, h_ref, acc_ref):
            body(a_ref, x_ref, w_ref, b_ref, y_ref, h_ref, acc_ref)
    else:
        def kernel(a_ref, x_ref, w_ref, b_ref, y_ref, acc_ref):
            body(a_ref, x_ref, w_ref, b_ref, y_ref, None, acc_ref)
    return kernel


def _gcn_layer(a_hat, x, w, b, *, emit_relu, tm, tk, x_resident):
    n_pad = a_hat.shape[0]
    fin = x.shape[1]
    fout = w.shape[1]
    assert n_pad % tm == 0 and n_pad % tk == 0

    grid = (n_pad // tm, n_pad // tk)

    if x_resident:
        # Constant block index => fetched once, stays VMEM-resident across grid.
        x_spec = pl.BlockSpec((n_pad, fin), lambda i, k: (0, 0))
    else:
        x_spec = pl.BlockSpec((tk, fin), lambda i, k: (k, 0))

    in_specs = [
        pl.BlockSpec((tm, tk), lambda i, k: (i, k)),      # A_hat tile (bf16, streamed)
        x_spec,                                           # X / H (bf16)
        pl.BlockSpec((fin, fout), lambda i, k: (0, 0)),   # W (bf16, resident)
        pl.BlockSpec((1, fout), lambda i, k: (0, 0)),     # b (f32, resident)
    ]
    y_spec = pl.BlockSpec((tm, fout), lambda i, k: (i, 0))
    if emit_relu:
        out_specs = (y_spec, pl.BlockSpec((tm, fout), lambda i, k: (i, 0)))
        out_shape = (jax.ShapeDtypeStruct((n_pad, fout), jnp.float32),
                     jax.ShapeDtypeStruct((n_pad, fout), jnp.bfloat16))
    else:
        out_specs = y_spec
        out_shape = jax.ShapeDtypeStruct((n_pad, fout), jnp.float32)

    return pl.pallas_call(
        _make_layer_kernel(emit_relu, x_resident, tk),
        grid=grid,
        in_specs=in_specs,
        out_specs=out_specs,
        out_shape=out_shape,
        scratch_shapes=[pltpu.VMEM((tm, fin), jnp.float32)],
        compiler_params=pltpu.CompilerParams(
            # Row axis shards across TensorCores (2 on v7x); k carries the
            # accumulator reduction so it must stay innermost / arbitrary.
            dimension_semantics=("parallel", "arbitrary"),
            vmem_limit_bytes=VMEM_LIMIT_BYTES,
        ),
    )(a_hat, x, w, b)


# ---------------------------------------------------------------------------
# Glue: D^{-1/2}(A+I)D^{-1/2} from edge_index (PyG gcn_norm semantics), built
# directly into a pre-padded buffer of the requested dtype (fused pad + cast).
# ---------------------------------------------------------------------------
def build_norm_adj(edge_index, num_nodes, *, n_pad=None, dtype=jnp.float32):
    n_pad = num_nodes if n_pad is None else n_pad
    row, col = edge_index[0], edge_index[1]
    loop = jnp.arange(num_nodes, dtype=edge_index.dtype)
    row = jnp.concatenate([row, loop])
    col = jnp.concatenate([col, loop])
    w = jnp.ones(row.shape[0], dtype=jnp.float32)

    deg = jnp.zeros((num_nodes,), jnp.float32).at[col].add(w)
    deg_inv_sqrt = jnp.where(deg > 0, jax.lax.rsqrt(deg), 0.0)
    norm = deg_inv_sqrt[row] * w * deg_inv_sqrt[col]

    # out[col] += norm * x[row]  =>  A_hat[col, row] += norm ; padded region stays 0.
    a_hat = (jnp.zeros((n_pad, n_pad), dtype)
             .at[col, row].add(norm.astype(dtype)))
    return a_hat


# ---------------------------------------------------------------------------
# Full 2-layer GCN forward.
# ---------------------------------------------------------------------------
def gcnet_forward(x, edge_index, w1, b1, w2, b2, *,
                  tile=512, force_tiled=False, x_resident=None):
    n, f = x.shape
    e = w1.shape[1]
    c = w2.shape[1]
    f_pad = _round_up(f, LANE)
    e_pad = _round_up(e, LANE)
    c_pad = _round_up(c, LANE)
    n_pad128 = _round_up(n, LANE)

    # Rough VMEM footprint of the fused single-call path (A, X, W, outputs,
    # intermediates). Kept conservative so it also fits v7x's 64 MiB/TC.
    fused_bytes = (2 * n_pad128 * n_pad128
                   + 2 * n_pad128 * f_pad
                   + 2 * (f_pad * e_pad + e_pad * c_pad)
                   + 4 * n_pad128 * (e_pad + c_pad)
                   + 4 * n_pad128 * f_pad + 6 * n_pad128 * e_pad)
    use_fused = (not force_tiled) and fused_bytes <= FUSE_VMEM_BUDGET

    if use_fused:
        n_pad = n_pad128
        tm = tk = n_pad
    else:
        tm = tk = min(tile, n_pad128)
        n_pad = _round_up(n, tm)

    # Zero padding is semantics-preserving: padded A_hat columns are zero so
    # padded nodes never contribute to real rows; padded W/b columns are zero so
    # padded output lanes are sliced away untouched.
    a_p = build_norm_adj(edge_index, n, n_pad=n_pad, dtype=jnp.bfloat16)
    x_p = _pad2(x, n_pad, f_pad).astype(jnp.bfloat16)
    w1_p = _pad2(w1, f_pad, e_pad).astype(jnp.bfloat16)
    b1_p = _pad2(jnp.asarray(b1).reshape(1, -1), 1, e_pad).astype(jnp.float32)
    w2_p = _pad2(w2, e_pad, c_pad).astype(jnp.bfloat16)
    b2_p = _pad2(jnp.asarray(b2).reshape(1, -1), 1, c_pad).astype(jnp.float32)

    if use_fused:
        logits_p, out_p = _gcn_fused(a_p, x_p, w1_p, b1_p, w2_p, b2_p)
    else:
        def decide_resident(fin):
            if x_resident is not None:
                return bool(x_resident)
            return 2 * n_pad * fin * 2 <= X_RESIDENT_BUDGET  # x2: double buffering

        logits_p, h_p = _gcn_layer(a_p, x_p, w1_p, b1_p, emit_relu=True,
                                   tm=tm, tk=tk, x_resident=decide_resident(f_pad))
        out_p = _gcn_layer(a_p, h_p, w2_p, b2_p, emit_relu=False,
                           tm=tm, tk=tk, x_resident=decide_resident(e_pad))

    return logits_p[:n, :e], out_p[:n, :c]


# ---------------------------------------------------------------------------
# Deterministic synthetic parameters (glorot-style weights, small random biases).
# ---------------------------------------------------------------------------
def init_params(key, num_features, num_embedding, nb_classes):
    k1, k2, k3, k4 = jax.random.split(key, 4)
    s1 = (6.0 / (num_features + num_embedding)) ** 0.5
    s2 = (6.0 / (num_embedding + nb_classes)) ** 0.5
    w1 = jax.random.uniform(k1, (num_features, num_embedding), jnp.float32, -s1, s1)
    w2 = jax.random.uniform(k2, (num_embedding, nb_classes), jnp.float32, -s2, s2)
    b1 = jax.random.uniform(k3, (1, num_embedding), jnp.float32, -0.5, 0.5)
    b2 = jax.random.uniform(k4, (1, nb_classes), jnp.float32, -0.5, 0.5)
    return w1, b1, w2, b2


# ---------------------------------------------------------------------------
# Pure-JAX reference mirroring the kernel's bf16 roundings (A, X, W, A@X, H),
# with HIGHEST-precision f32 matmuls.
# ---------------------------------------------------------------------------
def gcnet_ref(a_hat, x, w1, b1, w2, b2):
    hp = jax.lax.Precision.HIGHEST
    bf = lambda t: t.astype(jnp.bfloat16).astype(jnp.float32)
    a32, x32 = bf(a_hat), bf(x)
    ax = bf(jnp.dot(a32, x32, precision=hp))
    logits = jnp.dot(ax, bf(w1), precision=hp) + b1
    h = bf(jnp.maximum(logits, 0.0))
    ah = bf(jnp.dot(a32, h, precision=hp))
    out = jnp.dot(ah, bf(w2), precision=hp) + b2
    return logits, out


def _check(name, got, want, atol=5e-2, rtol=5e-2):
    err = float(jnp.max(jnp.abs(got - want)))
    assert jnp.allclose(got, want, atol=atol, rtol=rtol), f"{name}: max_abs_err={err}"


def _ring_edges(n):
    src = jnp.arange(n, dtype=jnp.int32)
    dst = (src + 1) % n
    return jnp.stack([jnp.concatenate([src, dst]),
                      jnp.concatenate([dst, src])], axis=0)


def _ring_plus_chord_edges(n, stride):
    src = jnp.arange(n, dtype=jnp.int32)
    d1 = (src + 1) % n
    d2 = (src + stride) % n
    s = jnp.concatenate([src, d1, src, d2])
    d = jnp.concatenate([d1, src, d2, src])
    return jnp.stack([s, d], axis=0)


if __name__ == "__main__":
    num_features = 8
    num_embedding = 128   # module default
    nb_classes = 6

    key = jax.random.PRNGKey(0)
    kx1, kx2, kp = jax.random.split(key, 3)
    w1, b1, w2, b2 = init_params(kp, num_features, num_embedding, nb_classes)

    # --- Graph 1: tiny ring (N=16) -> fused single-pallas_call path. ---
    n1 = 16
    edge1 = _ring_edges(n1)
    x1 = jax.random.normal(kx1, (n1, num_features), jnp.float32)

    logits1, out1 = gcnet_forward(x1, edge1, w1, b1, w2, b2)
    logits1 = jax.block_until_ready(logits1)
    out1 = jax.block_until_ready(out1)
    assert logits1.shape == (n1, num_embedding)
    assert out1.shape == (n1, nb_classes)

    a1 = build_norm_adj(edge1, n1)
    ref_l1, ref_o1 = gcnet_ref(a1, x1, w1, b1, w2, b2)
    _check("fused/logits", logits1, ref_l1)
    _check("fused/out", out1, ref_o1)

    # --- Graph 2: N=300 ring + chords -> tiled layer kernels (tile=256, grid 2x2),
    #     exercising both the VMEM-resident-X and the streaming-X variants. ---
    n2 = 300
    edge2 = _ring_plus_chord_edges(n2, 7)
    x2 = jax.random.normal(kx2, (n2, num_features), jnp.float32)
    a2 = build_norm_adj(edge2, n2)
    ref_l2, ref_o2 = gcnet_ref(a2, x2, w1, b1, w2, b2)

    for resident in (True, False):
        logits2, out2 = gcnet_forward(x2, edge2, w1, b1, w2, b2,
                                      tile=256, force_tiled=True,
                                      x_resident=resident)
        logits2 = jax.block_until_ready(logits2)
        out2 = jax.block_until_ready(out2)
        assert logits2.shape == (n2, num_embedding)
        assert out2.shape == (n2, nb_classes)
        _check(f"tiled(resident={resident})/logits", logits2, ref_l2)
        _check(f"tiled(resident={resident})/out", out2, ref_o2)

    print("KERNEL_OK")
</pallas_src>

<mosaic_0001>
module attributes {stable_mosaic.version = 11 : i64} {
  func.func @_fused_two_layer_kernel(%arg0: memref<128x128xbf16, #tpu.memory_space<vmem>>, %arg1: memref<128x128xbf16, #tpu.memory_space<vmem>>, %arg2: memref<128x128xbf16, #tpu.memory_space<vmem>>, %arg3: memref<1x128xf32, #tpu.memory_space<vmem>>, %arg4: memref<128x128xbf16, #tpu.memory_space<vmem>>, %arg5: memref<1x128xf32, #tpu.memory_space<vmem>>, %arg6: memref<128x128xf32, #tpu.memory_space<vmem>>, %arg7: memref<128x128xf32, #tpu.memory_space<vmem>>) attributes {dimension_semantics = [], scalar_prefetch = 0 : i64, scratch_operands = 0 : i64, tpu.core_type = #tpu.core_type<tc>} {
    %c0 = arith.constant 0 : index
    %c0_0 = arith.constant 0 : index
    %0 = vector.load %arg0[%c0, %c0_0] : memref<128x128xbf16, #tpu.memory_space<vmem>>, vector<128x128xbf16>
    %c0_1 = arith.constant 0 : index
    %c0_2 = arith.constant 0 : index
    %1 = vector.load %arg1[%c0_1, %c0_2] : memref<128x128xbf16, #tpu.memory_space<vmem>>, vector<128x128xbf16>
    %cst = arith.constant dense<0.000000e+00> : vector<128x128xf32>
    %2 = tpu.matmul %0, %1, %cst {dimension_numbers = #tpu.dot_dimension_numbers<[1], [0], [0], [1], [0, 0, 1, 1], [], []>} : vector<128x128xbf16>, vector<128x128xbf16>, vector<128x128xf32> -> vector<128x128xf32>
    %3 = arith.truncf %2 : vector<128x128xf32> to vector<128x128xbf16>
    %c0_3 = arith.constant 0 : index
    %c0_4 = arith.constant 0 : index
    %4 = vector.load %arg2[%c0_3, %c0_4] : memref<128x128xbf16, #tpu.memory_space<vmem>>, vector<128x128xbf16>
    %cst_5 = arith.constant dense<0.000000e+00> : vector<128x128xf32>
    %5 = tpu.matmul %3, %4, %cst_5 {dimension_numbers = #tpu.dot_dimension_numbers<[1], [0], [0], [1], [0, 0, 1, 1], [], []>} : vector<128x128xbf16>, vector<128x128xbf16>, vector<128x128xf32> -> vector<128x128xf32>
    %c0_6 = arith.constant 0 : index
    %c0_7 = arith.constant 0 : index
    %6 = vector.load %arg3[%c0_6, %c0_7] : memref<1x128xf32, #tpu.memory_space<vmem>>, vector<1x128xf32>
    %7 = vector.broadcast %6 : vector<1x128xf32> to vector<128x128xf32>
    %8 = arith.addf %5, %7 : vector<128x128xf32>
    %c0_8 = arith.constant 0 : index
    %c0_9 = arith.constant 0 : index
    %9 = vector.load %arg6[%c0_8, %c0_9] : memref<128x128xf32, #tpu.memory_space<vmem>>, vector<128x128xf32>
    tpu.vector_store %arg6[%c0_8, %c0_9], %8 {strides = array<i32>} : memref<128x128xf32, #tpu.memory_space<vmem>>, vector<128x128xf32>,
    %cst_10 = arith.constant 0.000000e+00 : f32
    %10 = vector.broadcast %cst_10 : f32 to vector<128x128xf32>
    %11 = arith.maximumf %8, %10 : vector<128x128xf32>
    %12 = arith.truncf %11 : vector<128x128xf32> to vector<128x128xbf16>
    %c0_11 = arith.constant 0 : index
    %c0_12 = arith.constant 0 : index
    %13 = vector.load %arg0[%c0_11, %c0_12] : memref<128x128xbf16, #tpu.memory_space<vmem>>, vector<128x128xbf16>
    %cst_13 = arith.constant dense<0.000000e+00> : vector<128x128xf32>
    %14 = tpu.matmul %13, %12, %cst_13 {dimension_numbers = #tpu.dot_dimension_numbers<[1], [0], [0], [1], [0, 0, 1, 1], [], []>} : vector<128x128xbf16>, vector<128x128xbf16>, vector<128x128xf32> -> vector<128x128xf32>
    %15 = arith.truncf %14 : vector<128x128xf32> to vector<128x128xbf16>
    %c0_14 = arith.constant 0 : index
    %c0_15 = arith.constant 0 : index
    %16 = vector.load %arg4[%c0_14, %c0_15] : memref<128x128xbf16, #tpu.memory_space<vmem>>, vector<128x128xbf16>
    %cst_16 = arith.constant dense<0.000000e+00> : vector<128x128xf32>
    %17 = tpu.matmul %15, %16, %cst_16 {dimension_numbers = #tpu.dot_dimension_numbers<[1], [0], [0], [1], [0, 0, 1, 1], [], []>} : vector<128x128xbf16>, vector<128x128xbf16>, vector<128x128xf32> -> vector<128x128xf32>
    %c0_17 = arith.constant 0 : index
    %c0_18 = arith.constant 0 : index
    %18 = vector.load %arg5[%c0_17, %c0_18] : memref<1x128xf32, #tpu.memory_space<vmem>>, vector<1x128xf32>
    %19 = vector.broadcast %18 : vector<1x128xf32> to vector<128x128xf32>
    %20 = arith.addf %17, %19 : vector<128x128xf32>
    %c0_19 = arith.constant 0 : index
    %c0_20 = arith.constant 0 : index
    %21 = vector.load %arg7[%c0_19, %c0_20] : memref<128x128xf32, #tpu.memory_space<vmem>>, vector<128x128xf32>
    tpu.vector_store %arg7[%c0_19, %c0_20], %20 {strides = array<i32>} : memref<128x128xf32, #tpu.memory_space<vmem>>, vector<128x128xf32>,
    return
  }
}

</mosaic_0001>

<bundles_post_ra>
// kernel: tpu_custom_call.1
= control target key start
LH: loop header
LB: loop body
LE: loop exit
PB: predicated region body
PF: predicated region fallthrough
CT: control target
= control target key end

     0   :  { %13 = vsyncpa [#allocation3], 0  ;;  %s1516_s0 = inlined_call_operand.hbm [shape: bf16[128,128], index: 0, kind: input, shape index: {}]   ;;  %s1517_s1 = inlined_call_operand.hbm [shape: bf16[128,128], index: 1, kind: input, shape index: {}]   ;;  %s1518_s2 = inlined_call_operand.hbm [shape: bf16[128,128], index: 2, kind: input, shape index: {}]   ;;  %s1519_s3 = inlined_call_operand.vmem [shape: f32[1,128], index: 3, kind: input, shape index: {}]   ;;  %s1520_s4 = inlined_call_operand.hbm [shape: bf16[128,128], index: 4, kind: input, shape index: {}]   ;;  %s1521_s5 = inlined_call_operand.vmem [shape: f32[1,128], index: 5, kind: input, shape index: {}]   ;;  %s1522_s6 = inlined_call_operand.hbm [shape: f32[128,128], index: 6, kind: output, shape index: {0}]   ;;  %s1523_s7 = inlined_call_operand.hbm [shape: f32[128,128], index: 7, kind: output, shape index: {1}]  }
   0x1   :  { %14 = vsyncpa [#allocation6], 0 }
   0x2   :  { %15 = vsyncpa [#allocation9], 0 }
   0x3   :  { %16 = vsyncpa [#allocation4], 0 }
   0x4   :  { %17 = vsyncpa [#allocation12], 0  ;;  %s1338_s24 = smov [#allocation5]   ;;  %s1339_s26 = smov [#allocation2]  }
   0x5   :  { %s35_s25 = sshll.u32 %s1338_s24, 4  ;;  %s23_s27 = sshll.u32 %s1339_s26, 4  ;;  %s36_s25 = int_to_ptr.vmem [resolvable:$true] %s35_s25  ;;  %s1388_s27 = int_to_ptr.vmem [resolvable:$true] %s23_s27 }
   0x6   :  { %s1196_s30 = scalar_lea.hbm %s1517_s1, 1024 }
   0x7   :  { %p1197_p0 = scmp.ne.s32.totalorder %s1517_s1, %s1196_s30  ;;  %p1200_p1 = scmp.lt.u32.totalorder %s1196_s30, %s1517_s1 }
   0x9   :  { %p1202_p2 = pnand %p1200_p1, %p1197_p0 }
   0xb   :  { %1205 = shalt.err (!%p1202_p2)
}
   0xc   :  { %s1206_s12 = scalar_lea.vmem %s36_s25, 1024  ;;  %p1211_p4 = scmp.lt.s32.totalorder %s36_s25, %s36_s25 }
   0xd   :  { %p1207_p3 = scmp.ne.s32.totalorder %s36_s25, %s1206_s12  ;;  %p1212_p5 = scmp.lt.s32.totalorder %s1206_s12, %s1206_s12 }
   0xf   :  { %p1213_p6 = por %p1212_p5, %p1211_p4 }
  0x11   :  { %p1214_p7 = pnand %p1213_p6, %p1207_p3 }
  0x13   :  { %1217 = shalt.err (!%p1214_p7)
}
  0x14   :  { %s1340_s13 = smov 64   ;;  %s1341_s14 = smov 4  }
  0x15   :  { %41 = dma.hbm_to_vmem [thread:$0]  %s1517_s1, 1024, %s36_s25, [#allocation6], %s1340_s13, %s1340_s13, %s1341_s14  }
  0x16   :  { %s1218_s19 = scalar_lea.hbm %s1516_s0, 1024 }
  0x17   :  { %p1219_p8 = scmp.ne.s32.totalorder %s1516_s0, %s1218_s19  ;;  %p1222_p9 = scmp.lt.u32.totalorder %s1218_s19, %s1516_s0 }
  0x19   :  { %p1224_p10 = pnand %p1222_p9, %p1219_p8 }
  0x1b   :  { %1227 = shalt.err (!%p1224_p10)
}
  0x1c   :  { %s1228_s24 = scalar_lea.vmem %s1388_s27, 1024  ;;  %p1233_p12 = scmp.lt.s32.totalorder %s1388_s27, %s1388_s27 }
  0x1d   :  { %p1229_p11 = scmp.ne.s32.totalorder %s1388_s27, %s1228_s24  ;;  %p1234_p13 = scmp.lt.s32.totalorder %s1228_s24, %s1228_s24 }
  0x1f   :  { %p1235_p0 = por %p1234_p13, %p1233_p12 }
  0x21   :  { %p1236_p1 = pnand %p1235_p0, %p1229_p11 }
  0x23   :  { %1239 = shalt.err (!%p1236_p1)
}
  0x24   :  { %29 = dma.hbm_to_vmem [thread:$0]  %s1516_s0, 1024, %s1388_s27, [#allocation3], %s1340_s13, %s1340_s13, %s1341_s14  }
  0x25   :  { %s1342_s26 = smov [#allocation7]   ;;  %s1343_s29 = smov [#allocation8]  }
  0x26   :  { %s47_s28 = sshll.u32 %s1342_s26, 4  ;;  %s61_s30 = sshll.u32 %s1343_s29, 4  ;;  %s48_s28 = int_to_ptr.vmem [resolvable:$true] %s47_s28  ;;  %s1425_s30 = int_to_ptr.vmem [resolvable:$true] %s61_s30 }
  0x27   :  { %s1240_s10 = scalar_lea.hbm %s1518_s2, 1024 }
  0x28   :  { %p1241_p2 = scmp.ne.s32.totalorder %s1518_s2, %s1240_s10  ;;  %p1244_p3 = scmp.lt.u32.totalorder %s1240_s10, %s1518_s2 }
  0x2a   :  { %p1246_p4 = pnand %p1244_p3, %p1241_p2 }
  0x2c   :  { %1249 = shalt.err (!%p1246_p4)
}
  0x2d   :  { %s1250_s0 = scalar_lea.vmem %s48_s28, 1024  ;;  %p1255_p6 = scmp.lt.s32.totalorder %s48_s28, %s48_s28 }
  0x2e   :  { %p1251_p5 = scmp.ne.s32.totalorder %s48_s28, %s1250_s0  ;;  %p1256_p7 = scmp.lt.s32.totalorder %s1250_s0, %s1250_s0 }
  0x30   :  { %p1257_p8 = por %p1256_p7, %p1255_p6 }
  0x32   :  { %p1258_p9 = pnand %p1257_p8, %p1251_p5 }
  0x34   :  { %1261 = shalt.err (!%p1258_p9)
}
  0x35   :  { %53 = dma.hbm_to_vmem [thread:$0]  %s1518_s2, 1024, %s48_s28, [#allocation6], %s1340_s13, %s1340_s13, %s1341_s14  }
  0x36   :  { %s1262_s20 = scalar_lea.hbm %s1520_s4, 1024 }
  0x37   :  { %p1263_p10 = scmp.ne.s32.totalorder %s1520_s4, %s1262_s20  ;;  %p1266_p11 = scmp.lt.u32.totalorder %s1262_s20, %s1520_s4 }
  0x39   :  { %p1268_p12 = pnand %p1266_p11, %p1263_p10 }
  0x3b   :  { %1271 = shalt.err (!%p1268_p12)
}
  0x3c   :  { %s1272_s1 = scalar_lea.vmem %s1425_s30, 1024  ;;  %p1277_p0 = scmp.lt.s32.totalorder %s1425_s30, %s1425_s30 }
  0x3d   :  { %p1273_p13 = scmp.ne.s32.totalorder %s1425_s30, %s1272_s1  ;;  %p1278_p1 = scmp.lt.s32.totalorder %s1272_s1, %s1272_s1 }
  0x3f   :  { %p1279_p2 = por %p1278_p1, %p1277_p0 }
  0x41   :  { %p1280_p3 = pnand %p1279_p2, %p1273_p13 }
  0x43   :  { %1283 = shalt.err (!%p1280_p3)
}
  0x44   :  { %67 = dma.hbm_to_vmem [thread:$0]  %s1520_s4, 1024, %s1425_s30, [#allocation9], %s1340_s13, %s1340_s13, %s1341_s14  }
  0x45   :  { %1328 = dma.done.wait [#allocation3], 1024  }
  0x46   :  { %1329 = vsyncadd [#allocation3], 4294966272 }
  0x47   :  { %1330 = dma.done.wait [#allocation6], 2048  }
  0x48   :  { %1331 = vsyncadd [#allocation6], 4294965248 }
  0x49   :  { %1332 = dma.done.wait [#allocation9], 1024  }
  0x4a   :  { %1333 = vsyncadd [#allocation9], 4294966272  ;;  %v1156_v0 = vld [vmem:[#allocation5] sm:$0xff]   ;;  %v1157_v1 = vld [vmem:[#allocation5 + $0x8] sm:$0xff]  }
  0x4b   :  { %1018 = vmatprep.subr.bf16.mxu0 %v1156_v0  ;;  %v1158_v2 = vld [vmem:[#allocation5 + $0x10] sm:$0xff]   ;;  %v1159_v3 = vld [vmem:[#allocation5 + $0x18] sm:$0xff]   ;;  %v1164_v4 = vld [vmem:[#allocation2] sm:$0xff]  }
  0x4c   :  { %1019 = vmatpush3.bf16.msra.mxu0 %v1156_v0  ;;  %1034 = vmatprep.mubr.bf16.mxu0 %v1164_v4  ;;  %v1160_v5 = vld [vmem:[#allocation5 + $0x20] sm:$0xff]   ;;  %v1161_v6 = vld [vmem:[#allocation5 + $0x28] sm:$0xff]   ;;  %v1162_v9 = vld [vmem:[#allocation5 + $0x30] sm:$0xff]  }
  0x4d   :  { %1020 = vmatprep.subr.bf16.mxu0 %v1157_v1  ;;  %v1172_v7 = vld [vmem:[#allocation7] sm:$0xff]   ;;  %v1173_v8 = vld [vmem:[#allocation7 + $0x8] sm:$0xff]   ;;  %v1174_v10 = vld [vmem:[#allocation7 + $0x10] sm:$0xff]  }
  0x4e   :  { %1050 = vmatprep.subr.bf16.mxu1 %v1172_v7  ;;  %v1163_v11 = vld [vmem:[#allocation5 + $0x38] sm:$0xff]   ;;  %v1176_v13 = vld [vmem:[#allocation7 + $0x20] sm:$0xff]   ;;  %v1165_v14 = vld [vmem:[#allocation2 + $0x8] sm:$0xff]  }
  0x4f   :  { %1051 = vmatpush3.bf16.msra.mxu1 %v1172_v7  ;;  %v1175_v12 = vld [vmem:[#allocation7 + $0x18] sm:$0xff]   ;;  %v1166_v15 = vld [vmem:[#allocation2 + $0x10] sm:$0xff]   ;;  %v1177_v16 = vld [vmem:[#allocation7 + $0x28] sm:$0xff]  }
  0x50   :  { %1021 = vmatpush3.bf16.msra.mxu0 %v1157_v1  ;;  %1052 = vmatprep.subr.bf16.mxu1 %v1173_v8  ;;  %v1178_v17 = vld [vmem:[#allocation7 + $0x30] sm:$0xff]   ;;  %v1167_v18 = vld [vmem:[#allocation2 + $0x18] sm:$0xff]   ;;  %v1168_v19 = vld [vmem:[#allocation2 + $0x20] sm:$0xff]  }
  0x51   :  { %1022 = vmatprep.subr.bf16.mxu0 %v1158_v2  ;;  %v1169_v20 = vld [vmem:[#allocation2 + $0x28] sm:$0xff]   ;;  %v1170_v21 = vld [vmem:[#allocation2 + $0x30] sm:$0xff]   ;;  %v1171_v22 = vld [vmem:[#allocation2 + $0x38] sm:$0xff]  }
  0x52   :  { %v1179_v23 = vld [vmem:[#allocation7 + $0x38] sm:$0xff]   ;;  %v1180_v48 = vld [vmem:[#allocation2] sm:$0xff]   ;;  %v1189_v50 = vld [vmem:[#allocation8 + $0x8] sm:$0xff]  }
  0x53   :  { %1053 = vmatpush3.bf16.msra.mxu1 %v1173_v8  ;;  %v1188_v49 = vld [vmem:[#allocation8] sm:$0xff]   ;;  %v1190_v51 = vld [vmem:[#allocation8 + $0x10] sm:$0xff]   ;;  %v1191_v52 = vld [vmem:[#allocation8 + $0x18] sm:$0xff]  }
  0x54   :  { %1023 = vmatpush3.bf16.msra.mxu0 %v1158_v2  ;;  %1054 = vmatprep.subr.bf16.mxu1 %v1174_v10  ;;  %v1192_v53 = vld [vmem:[#allocation8 + $0x20] sm:$0xff]   ;;  %v1193_v54 = vld [vmem:[#allocation8 + $0x28] sm:$0xff]   ;;  %v1194_v55 = vld [vmem:[#allocation8 + $0x30] sm:$0xff]  }
  0x55   :  { %1024 = vmatprep.subr.bf16.mxu0 %v1159_v3  ;;  %v1465_v56 = vld [vmem:[%s1519_s3] ss:$0 sm:$0xff]  ;;  %s1344_s3 = smov [#allocation10]  }
  0x56   :  { %s882_s14 = sshll.u32 %s1344_s3, 4  ;;  %s883_s14 = int_to_ptr.vmem [resolvable:$true] %s882_s14 }
  0x57   :  { %1055 = vmatpush3.bf16.msra.mxu1 %v1174_v10  ;;  %s1284_s26 = scalar_lea.vmem %s883_s14, 2048  ;;  %p1289_p5 = scmp.lt.s32.totalorder %s883_s14, %s883_s14 }
  0x58   :  { %1025 = vmatpush3.bf16.msra.mxu0 %v1159_v3  ;;  %1056 = vmatprep.subr.bf16.mxu1 %v1175_v12  ;;  %p1285_p4 = scmp.ne.s32.totalorder %s883_s14, %s1284_s26  ;;  %p1290_p6 = scmp.lt.s32.totalorder %s1284_s26, %s1284_s26 }
  0x59   :  { %1026 = vmatprep.subr.bf16.mxu0 %v1160_v5 }
  0x5a   :  { %p1291_p7 = por %p1290_p6, %p1289_p5 }
  0x5b   :  { %1057 = vmatpush3.bf16.msra.mxu1 %v1175_v12 }
  0x5c   :  { %1027 = vmatpush3.bf16.msra.mxu0 %v1160_v5  ;;  %1058 = vmatprep.subr.bf16.mxu1 %v1176_v13  ;;  %p1292_p8 = pnand %p1291_p7, %p1285_p4 }
  0x5d   :  { %1028 = vmatprep.subr.bf16.mxu0 %v1161_v6 }
  0x5f   :  { %1059 = vmatpush3.bf16.msra.mxu1 %v1176_v13 }
  0x60   :  { %1029 = vmatpush3.bf16.msra.mxu0 %v1161_v6  ;;  %1060 = vmatprep.subr.bf16.mxu1 %v1177_v16 }
  0x61   :  { %1030 = vmatprep.subr.bf16.mxu0 %v1162_v9 }
  0x63   :  { %1061 = vmatpush3.bf16.msra.mxu1 %v1177_v16 }
  0x64   :  { %1031 = vmatpush3.bf16.msra.mxu0 %v1162_v9  ;;  %1062 = vmatprep.subr.bf16.mxu1 %v1178_v17 }
  0x65   :  { %1032 = vmatprep.subr.bf16.mxu0 %v1163_v11 }
  0x67   :  { %1063 = vmatpush3.bf16.msra.mxu1 %v1178_v17 }
  0x68   :  { %1033 = vmatpush3.bf16.msra.mxu0 %v1163_v11  ;;  %1064 = vmatprep.subr.bf16.mxu1 %v1179_v23 }
  0x6b   :  { %1035 = vmatmul.mubr.bf16.vlgmr.msra.gmra.mrb[0].mxu0 %v1165_v14  ;;  %1065 = vmatpush3.bf16.msra.mxu1 %v1179_v23 }
  0x6c   :  { %1038 = vmatprep.mubr.bf16.mxu0 %v1166_v15  ;;  %1114 = vmatprep.subr.bf16.mxu1 %v1188_v49 }
  0x73   :  { %1039 = vmatmul.mubr.bf16.gmra.mrb[4].mxu0 %v1167_v18 }
  0x74   :  { %1042 = vmatprep.mubr.bf16.mxu0 %v1168_v19 }
  0x7b   :  { %1043 = vmatmul.mubr.bf16.gmra.mrb[8].mxu0 %v1169_v20 }
  0x7c   :  { %1046 = vmatprep.mubr.bf16.mxu0 %v1170_v21 }
  0x83   :  { %1047 = vmatmul.mubr.bf16.gmra.mrb[12].mxu0 %v1171_v22 }
  0x84   :  { %1098 = vmatprep.mubr.bf16.mxu0 %v1180_v48 }
 0x13e   :  { %v1036_v24 = vpop.f32.mrb[0].mxu0 }
 0x13f   :  { %v245_v25 = vpop.f32.mrb[1].mxu0 }
 0x140   :  { %v1037_v26 = vpop.f32.mrb[2].mxu0 }
 0x141   :  { %v309_v27 = vpack.c.bf16 %v1037_v26, %v1036_v24  ;;  %v248_v28 = vpop.f32.mrb[3].mxu0 }
 0x142   :  { %v308_v29 = vpack.c.bf16 %v248_v28, %v245_v25 }
 0x144   :  { %1066 = vmatprep.mubr.bf16.mxu1 %v308_v29 }
 0x145   :  { %1067 = vmatmul.mubr.bf16.vlgmr.msra.gmra.mrb[0].mxu1 %v309_v27 }
 0x146   :  { %v1040_v30 = vpop.f32.mrb[4].mxu0  ;;  %1115 = vmatpush3.bf16.msra.mxu1 %v1188_v49  ;;  %v1181_v49 = vld [vmem:[#allocation2 + $0x8] sm:$0xff]  }
 0x147   :  { %v261_v31 = vpop.f32.mrb[5].mxu0  ;;  %1116 = vmatprep.subr.bf16.mxu1 %v1189_v50 }
 0x148   :  { %v1041_v32 = vpop.f32.mrb[6].mxu0 }
 0x149   :  { %v311_v33 = vpack.c.bf16 %v1041_v32, %v1040_v30  ;;  %v264_v34 = vpop.f32.mrb[7].mxu0 }
 0x14a   :  { %v310_v35 = vpack.c.bf16 %v264_v34, %v261_v31  ;;  %1117 = vmatpush3.bf16.msra.mxu1 %v1189_v50  ;;  %v1182_v50 = vld [vmem:[#allocation2 + $0x10] sm:$0xff]  }
 0x14b   :  { %1118 = vmatprep.subr.bf16.mxu1 %v1190_v51 }
 0x14c   :  { %1070 = vmatprep.mubr.bf16.mxu1 %v310_v35 }
 0x14d   :  { %1071 = vmatmul.mubr.bf16.gmra.mrb[4].mxu1 %v311_v33 }
 0x14e   :  { %v1044_v36 = vpop.f32.mrb[8].mxu0  ;;  %1119 = vmatpush3.bf16.msra.mxu1 %v1190_v51  ;;  %v1183_v51 = vld [vmem:[#allocation2 + $0x18] sm:$0xff]  }
 0x14f   :  { %v277_v37 = vpop.f32.mrb[9].mxu0  ;;  %1120 = vmatprep.subr.bf16.mxu1 %v1191_v52 }
 0x150   :  { %v1045_v38 = vpop.f32.mrb[10].mxu0 }
 0x151   :  { %v313_v39 = vpack.c.bf16 %v1045_v38, %v1044_v36  ;;  %v280_v40 = vpop.f32.mrb[11].mxu0 }
 0x152   :  { %v312_v41 = vpack.c.bf16 %v280_v40, %v277_v37  ;;  %1121 = vmatpush3.bf16.msra.mxu1 %v1191_v52  ;;  %v1184_v52 = vld [vmem:[#allocation2 + $0x20] sm:$0xff]  }
 0x153   :  { %1122 = vmatprep.subr.bf16.mxu1 %v1192_v53 }
 0x154   :  { %1074 = vmatprep.mubr.bf16.mxu1 %v312_v41 }
 0x155   :  { %1075 = vmatmul.mubr.bf16.gmra.mrb[8].mxu1 %v313_v39 }
 0x156   :  { %v1048_v42 = vpop.f32.mrb[12].mxu0  ;;  %1123 = vmatpush3.bf16.msra.mxu1 %v1192_v53  ;;  %v1185_v53 = vld [vmem:[#allocation2 + $0x28] sm:$0xff]  }
 0x157   :  { %v293_v43 = vpop.f32.mrb[13].mxu0  ;;  %1124 = vmatprep.subr.bf16.mxu1 %v1193_v54 }
 0x158   :  { %v1049_v44 = vpop.f32.mrb[14].mxu0 }
 0x159   :  { %v315_v45 = vpack.c.bf16 %v1049_v44, %v1048_v42  ;;  %v296_v46 = vpop.f32.mrb[15].mxu0 }
 0x15a   :  { %v314_v47 = vpack.c.bf16 %v296_v46, %v293_v43  ;;  %1125 = vmatpush3.bf16.msra.mxu1 %v1193_v54  ;;  %v1186_v54 = vld [vmem:[#allocation2 + $0x30] sm:$0xff]  }
 0x15b   :  { %1126 = vmatprep.subr.bf16.mxu1 %v1194_v55 }
 0x15c   :  { %1078 = vmatprep.mubr.bf16.mxu1 %v314_v47 }
 0x15d   :  { %1079 = vmatmul.mubr.bf16.gmra.mrb[12].mxu1 %v315_v45 }
 0x15e   :  { %1127 = vmatpush3.bf16.msra.mxu1 %v1194_v55  ;;  %v1187_v55 = vld [vmem:[#allocation2 + $0x38] sm:$0xff]  }
 0x218   :  { %v1068_v57 = vpop.f32.mrb[0].mxu1 }
 0x219   :  { %v430_v58 = vadd.f32 %v1068_v57, %v1465_v56  ;;  %v421_v59 = vpop.f32.mrb[1].mxu1 }
 0x21a   :  { %v422_v60 = vadd.f32 %v1465_v56, %v421_v59  ;;  %v1069_v61 = vpop.f32.mrb[2].mxu1 }
 0x21b   :  { %486 = vst [vmem:[#allocation10 + $0x10] sm:$0xff] %v430_v58  ;;  %v433_v62 = vadd.f32 %v1069_v61, %v1465_v56  ;;  %v424_v63 = vpop.f32.mrb[3].mxu1  ;;  %v502_v1 = vmax.f32 %v430_v58, 0.0 }
 0x21c   :  { %484 = vst [vmem:[#allocation10] sm:$0xff] %v422_v60  ;;  %v425_v0 = vadd.f32 %v1465_v56, %v424_v63  ;;  %v500_v3 = vmax.f32 %v422_v60, 0.0 }
 0x21d   :  { %487 = vst [vmem:[#allocation10 + $0x18] sm:$0xff] %v433_v62  ;;  %v503_v2 = vmax.f32 %v433_v62, 0.0 }
 0x21e   :  { %485 = vst [vmem:[#allocation10 + $0x8] sm:$0xff] %v425_v0  ;;  %v501_v4 = vmax.f32 %v425_v0, 0.0 }
 0x21f   :  { %v517_v5 = vpack.c.bf16 %v503_v2, %v502_v1 }
 0x220   :  { %v1072_v6 = vpop.f32.mrb[4].mxu1  ;;  %v516_v7 = vpack.c.bf16 %v501_v4, %v500_v3 }
 0x221   :  { %v446_v8 = vadd.f32 %v1072_v6, %v1465_v56  ;;  %v437_v9 = vpop.f32.mrb[5].mxu1 }
 0x222   :  { %v438_v10 = vadd.f32 %v1465_v56, %v437_v9  ;;  %v1073_v11 = vpop.f32.mrb[6].mxu1  ;;  %1082 = vmatprep.subr.bf16.mxu0 %v516_v7 }
 0x223   :  { %490 = vst [vmem:[#allocation10 + $0x30] sm:$0xff] %v446_v8  ;;  %v449_v12 = vadd.f32 %v1073_v11, %v1465_v56  ;;  %v440_v13 = vpop.f32.mrb[7].mxu1  ;;  %1083 = vmatpush3.bf16.msra.mxu0 %v516_v7  ;;  %v506_v15 = vmax.f32 %v446_v8, 0.0 }
 0x224   :  { %488 = vst [vmem:[#allocation10 + $0x20] sm:$0xff] %v438_v10  ;;  %v441_v14 = vadd.f32 %v1465_v56, %v440_v13  ;;  %1084 = vmatprep.subr.bf16.mxu0 %v517_v5  ;;  %v504_v17 = vmax.f32 %v438_v10, 0.0 }
 0x225   :  { %491 = vst [vmem:[#allocation10 + $0x38] sm:$0xff] %v449_v12  ;;  %v507_v16 = vmax.f32 %v449_v12, 0.0 }
 0x226   :  { %489 = vst [vmem:[#allocation10 + $0x28] sm:$0xff] %v441_v14  ;;  %v505_v18 = vmax.f32 %v441_v14, 0.0 }
 0x227   :  { %1085 = vmatpush3.bf16.msra.mxu0 %v517_v5  ;;  %v519_v19 = vpack.c.bf16 %v507_v16, %v506_v15 }
 0x228   :  { %v1076_v20 = vpop.f32.mrb[8].mxu1  ;;  %v518_v21 = vpack.c.bf16 %v505_v18, %v504_v17 }
 0x229   :  { %v462_v22 = vadd.f32 %v1076_v20, %v1465_v56  ;;  %v453_v23 = vpop.f32.mrb[9].mxu1 }
 0x22a   :  { %v454_v24 = vadd.f32 %v1465_v56, %v453_v23  ;;  %v1077_v25 = vpop.f32.mrb[10].mxu1  ;;  %1086 = vmatprep.subr.bf16.mxu0 %v518_v21 }
 0x22b   :  { %494 = vst [vmem:[#allocation10 + $0x50] sm:$0xff] %v462_v22  ;;  %v465_v26 = vadd.f32 %v1077_v25, %v1465_v56  ;;  %v456_v27 = vpop.f32.mrb[11].mxu1  ;;  %1087 = vmatpush3.bf16.msra.mxu0 %v518_v21  ;;  %v510_v29 = vmax.f32 %v462_v22, 0.0 }
 0x22c   :  { %492 = vst [vmem:[#allocation10 + $0x40] sm:$0xff] %v454_v24  ;;  %v457_v28 = vadd.f32 %v1465_v56, %v456_v27  ;;  %1088 = vmatprep.subr.bf16.mxu0 %v519_v19  ;;  %v508_v31 = vmax.f32 %v454_v24, 0.0 }
 0x22d   :  { %495 = vst [vmem:[#allocation10 + $0x58] sm:$0xff] %v465_v26  ;;  %v511_v30 = vmax.f32 %v465_v26, 0.0 }
 0x22e   :  { %493 = vst [vmem:[#allocation10 + $0x48] sm:$0xff] %v457_v28  ;;  %v509_v32 = vmax.f32 %v457_v28, 0.0 }
 0x22f   :  { %1089 = vmatpush3.bf16.msra.mxu0 %v519_v19  ;;  %v521_v33 = vpack.c.bf16 %v511_v30, %v510_v29 }
 0x230   :  { %v1080_v34 = vpop.f32.mrb[12].mxu1  ;;  %v520_v35 = vpack.c.bf16 %v509_v32, %v508_v31 }
 0x231   :  { %v478_v36 = vadd.f32 %v1080_v34, %v1465_v56  ;;  %v469_v37 = vpop.f32.mrb[13].mxu1 }
 0x232   :  { %v470_v38 = vadd.f32 %v1465_v56, %v469_v37  ;;  %v1081_v39 = vpop.f32.mrb[14].mxu1  ;;  %1090 = vmatprep.subr.bf16.mxu0 %v520_v35 }
 0x233   :  { %498 = vst [vmem:[#allocation10 + $0x70] sm:$0xff] %v478_v36  ;;  %v481_v40 = vadd.f32 %v1081_v39, %v1465_v56  ;;  %v472_v41 = vpop.f32.mrb[15].mxu1  ;;  %1091 = vmatpush3.bf16.msra.mxu0 %v520_v35  ;;  %v514_v43 = vmax.f32 %v478_v36, 0.0 }
 0x234   :  { %496 = vst [vmem:[#allocation10 + $0x60] sm:$0xff] %v470_v38  ;;  %v473_v42 = vadd.f32 %v1465_v56, %v472_v41  ;;  %1092 = vmatprep.subr.bf16.mxu0 %v521_v33  ;;  %v512_v45 = vmax.f32 %v470_v38, 0.0  ;;  %v1195_v56 = vld [vmem:[#allocation8 + $0x38] sm:$0xff]  }
 0x235   :  { %499 = vst [vmem:[#allocation10 + $0x78] sm:$0xff] %v481_v40  ;;  %v515_v44 = vmax.f32 %v481_v40, 0.0  ;;  %1128 = vmatprep.subr.bf16.mxu1 %v1195_v56 }
 0x236   :  { %497 = vst [vmem:[#allocation10 + $0x68] sm:$0xff] %v473_v42  ;;  %v513_v46 = vmax.f32 %v473_v42, 0.0  ;;  %1129 = vmatpush3.bf16.msra.mxu1 %v1195_v56 }
 0x237   :  { %1093 = vmatpush3.bf16.msra.mxu0 %v521_v33  ;;  %v523_v47 = vpack.c.bf16 %v515_v44, %v514_v43 }
 0x238   :  { %v522_v48 = vpack.c.bf16 %v513_v46, %v512_v45 }
 0x23a   :  { %1094 = vmatprep.subr.bf16.mxu0 %v522_v48 }
 0x23b   :  { %1095 = vmatpush3.bf16.msra.mxu0 %v522_v48 }
 0x23c   :  { %1096 = vmatprep.subr.bf16.mxu0 %v523_v47 }
 0x23f   :  { %1097 = vmatpush3.bf16.msra.mxu0 %v523_v47 }
 0x242   :  { %1099 = vmatmul.mubr.bf16.vlgmr.msra.gmra.mrb[16].mxu0 %v1181_v49 }
 0x243   :  { %1102 = vmatprep.mubr.bf16.mxu0 %v1182_v50 }
 0x24a   :  { %1103 = vmatmul.mubr.bf16.gmra.mrb[20].mxu0 %v1183_v51 }
 0x24b   :  { %1106 = vmatprep.mubr.bf16.mxu0 %v1184_v52 }
 0x252   :  { %1107 = vmatmul.mubr.bf16.gmra.mrb[24].mxu0 %v1185_v53 }
 0x253   :  { %1110 = vmatprep.mubr.bf16.mxu0 %v1186_v54 }
 0x25a   :  { %1111 = vmatmul.mubr.bf16.gmra.mrb[28].mxu0 %v1187_v55 }
 0x315   :  { %v1100_v57 = vpop.f32.mrb[16].mxu0 }
 0x316   :  { %v622_v58 = vpop.f32.mrb[17].mxu0 }
 0x317   :  { %v1101_v59 = vpop.f32.mrb[18].mxu0 }
 0x318   :  { %v686_v60 = vpack.c.bf16 %v1101_v59, %v1100_v57  ;;  %v625_v61 = vpop.f32.mrb[19].mxu0 }
 0x319   :  { %v685_v62 = vpack.c.bf16 %v625_v61, %v622_v58 }
 0x31b   :  { %1130 = vmatprep.mubr.bf16.mxu1 %v685_v62 }
 0x31c   :  { %1131 = vmatmul.mubr.bf16.vlgmr.msra.gmra.mrb[16].mxu1 %v686_v60 }
 0x31d   :  { %v1104_v63 = vpop.f32.mrb[20].mxu0 }
 0x31e   :  { %v638_v0 = vpop.f32.mrb[21].mxu0 }
 0x31f   :  { %v1105_v1 = vpop.f32.mrb[22].mxu0 }
 0x320   :  { %v688_v2 = vpack.c.bf16 %v1105_v1, %v1104_v63  ;;  %v641_v3 = vpop.f32.mrb[23].mxu0 }
 0x321   :  { %v687_v4 = vpack.c.bf16 %v641_v3, %v638_v0 }
 0x323   :  { %1134 = vmatprep.mubr.bf16.mxu1 %v687_v4 }
 0x324   :  { %1135 = vmatmul.mubr.bf16.gmra.mrb[20].mxu1 %v688_v2 }
 0x325   :  { %v1108_v5 = vpop.f32.mrb[24].mxu0 }
 0x326   :  { %v654_v6 = vpop.f32.mrb[25].mxu0 }
 0x327   :  { %v1109_v7 = vpop.f32.mrb[26].mxu0 }
 0x328   :  { %v690_v8 = vpack.c.bf16 %v1109_v7, %v1108_v5  ;;  %v657_v9 = vpop.f32.mrb[27].mxu0 }
 0x329   :  { %v689_v10 = vpack.c.bf16 %v657_v9, %v654_v6 }
 0x32b   :  { %1138 = vmatprep.mubr.bf16.mxu1 %v689_v10 }
 0x32c   :  { %1139 = vmatmul.mubr.bf16.gmra.mrb[24].mxu1 %v690_v8 }
 0x32d   :  { %v1112_v11 = vpop.f32.mrb[28].mxu0 }
 0x32e   :  { %v670_v12 = vpop.f32.mrb[29].mxu0 }
 0x32f   :  { %v1113_v13 = vpop.f32.mrb[30].mxu0 }
 0x330   :  { %v692_v14 = vpack.c.bf16 %v1113_v13, %v1112_v11  ;;  %v673_v15 = vpop.f32.mrb[31].mxu0 }
 0x331   :  { %v691_v16 = vpack.c.bf16 %v673_v15, %v670_v12 }
 0x333   :  { %1142 = vmatprep.mubr.bf16.mxu1 %v691_v16 }
 0x334   :  { %1143 = vmatmul.mubr.bf16.gmra.mrb[28].mxu1 %v692_v14 }
 0x335   :  { %1295 = shalt.err (!%p1292_p8)
}
 0x336   :  { %s1296_s30 = scalar_lea.hbm %s1522_s6, 2048 }
 0x337   :  { %p1297_p9 = scmp.ne.s32.totalorder %s1522_s6, %s1296_s30  ;;  %p1300_p10 = scmp.lt.u32.totalorder %s1296_s30, %s1522_s6 }
 0x339   :  { %p1302_p11 = pnand %p1300_p10, %p1297_p9 }
 0x33b   :  { %1305 = shalt.err (!%p1302_p11)
}
 0x33c   :  { %s1345_s12 = smov 128   ;;  %s1346_s15 = smov 8   ;;  %v945_v17 = vld [vmem:[%s1521_s5] ss:$0 sm:$0xff] }
 0x33d   :  { %888 = dma.vmem_to_hbm [thread:$0]  %s883_s14, 2048, %s1522_s6, [#allocation4], %s1345_s12, %s1345_s12, %s1346_s15  }
 0x33e   :  { %s1347_s5 = smov [#allocation11]  }
 0x33f   :  { %s894_s6 = sshll.u32 %s1347_s5, 4  ;;  %s895_s6 = int_to_ptr.vmem [resolvable:$true] %s894_s6 }
 0x340   :  { %s1306_s18 = scalar_lea.vmem %s895_s6, 2048  ;;  %p1311_p13 = scmp.lt.s32.totalorder %s895_s6, %s895_s6 }
 0x341   :  { %p1307_p12 = scmp.ne.s32.totalorder %s895_s6, %s1306_s18  ;;  %p1312_p0 = scmp.lt.s32.totalorder %s1306_s18, %s1306_s18 }
 0x343   :  { %p1313_p1 = por %p1312_p0, %p1311_p13 }
 0x345   :  { %p1314_p2 = pnand %p1313_p1, %p1307_p12 }
 0x3ef   :  { %v1132_v18 = vpop.f32.mrb[16].mxu1 }
 0x3f0   :  { %v807_v19 = vadd.f32 %v1132_v18, %v945_v17  ;;  %v798_v20 = vpop.f32.mrb[17].mxu1 }
 0x3f1   :  { %v799_v21 = vadd.f32 %v945_v17, %v798_v20  ;;  %v1133_v22 = vpop.f32.mrb[18].mxu1 }
 0x3f2   :  { %863 = vst [vmem:[#allocation11 + $0x10] sm:$0xff] %v807_v19  ;;  %v810_v23 = vadd.f32 %v1133_v22, %v945_v17  ;;  %v801_v24 = vpop.f32.mrb[19].mxu1 }
 0x3f3   :  { %861 = vst [vmem:[#allocation11] sm:$0xff] %v799_v21  ;;  %v802_v25 = vadd.f32 %v945_v17, %v801_v24 }
 0x3f4   :  { %864 = vst [vmem:[#allocation11 + $0x18] sm:$0xff] %v810_v23 }
 0x3f5   :  { %862 = vst [vmem:[#allocation11 + $0x8] sm:$0xff] %v802_v25 }
 0x3f7   :  { %v1136_v26 = vpop.f32.mrb[20].mxu1 }
 0x3f8   :  { %v823_v27 = vadd.f32 %v1136_v26, %v945_v17  ;;  %v814_v28 = vpop.f32.mrb[21].mxu1 }
 0x3f9   :  { %v815_v29 = vadd.f32 %v945_v17, %v814_v28  ;;  %v1137_v30 = vpop.f32.mrb[22].mxu1 }
 0x3fa   :  { %867 = vst [vmem:[#allocation11 + $0x30] sm:$0xff] %v823_v27  ;;  %v826_v31 = vadd.f32 %v1137_v30, %v945_v17  ;;  %v817_v32 = vpop.f32.mrb[23].mxu1 }
 0x3fb   :  { %865 = vst [vmem:[#allocation11 + $0x20] sm:$0xff] %v815_v29  ;;  %v818_v33 = vadd.f32 %v945_v17, %v817_v32 }
 0x3fc   :  { %868 = vst [vmem:[#allocation11 + $0x38] sm:$0xff] %v826_v31 }
 0x3fd   :  { %866 = vst [vmem:[#allocation11 + $0x28] sm:$0xff] %v818_v33 }
 0x3ff   :  { %v1140_v34 = vpop.f32.mrb[24].mxu1 }
 0x400   :  { %v839_v35 = vadd.f32 %v1140_v34, %v945_v17  ;;  %v830_v36 = vpop.f32.mrb[25].mxu1 }
 0x401   :  { %v831_v37 = vadd.f32 %v945_v17, %v830_v36  ;;  %v1141_v38 = vpop.f32.mrb[26].mxu1 }
 0x402   :  { %871 = vst [vmem:[#allocation11 + $0x50] sm:$0xff] %v839_v35  ;;  %v842_v39 = vadd.f32 %v1141_v38, %v945_v17  ;;  %v833_v40 = vpop.f32.mrb[27].mxu1 }
 0x403   :  { %869 = vst [vmem:[#allocation11 + $0x40] sm:$0xff] %v831_v37  ;;  %v834_v41 = vadd.f32 %v945_v17, %v833_v40 }
 0x404   :  { %872 = vst [vmem:[#allocation11 + $0x58] sm:$0xff] %v842_v39 }
 0x405   :  { %870 = vst [vmem:[#allocation11 + $0x48] sm:$0xff] %v834_v41 }
 0x407   :  { %v1144_v42 = vpop.f32.mrb[28].mxu1 }
 0x408   :  { %v855_v43 = vadd.f32 %v1144_v42, %v945_v17  ;;  %v846_v44 = vpop.f32.mrb[29].mxu1 }
 0x409   :  { %v847_v45 = vadd.f32 %v945_v17, %v846_v44  ;;  %v1145_v46 = vpop.f32.mrb[30].mxu1 }
 0x40a   :  { %875 = vst [vmem:[#allocation11 + $0x70] sm:$0xff] %v855_v43  ;;  %v858_v47 = vadd.f32 %v1145_v46, %v945_v17  ;;  %v849_v48 = vpop.f32.mrb[31].mxu1 }
 0x40b   :  { %873 = vst [vmem:[#allocation11 + $0x60] sm:$0xff] %v847_v45  ;;  %v850_v49 = vadd.f32 %v945_v17, %v849_v48 }
 0x40c   :  { %876 = vst [vmem:[#allocation11 + $0x78] sm:$0xff] %v858_v47 }
 0x40d   :  { %874 = vst [vmem:[#allocation11 + $0x68] sm:$0xff] %v850_v49 }
 0x40e   :  { %1317 = shalt.err (!%p1314_p2)
}
 0x40f   :  { %s1318_s21 = scalar_lea.hbm %s1523_s7, 2048 }
 0x410   :  { %p1319_p3 = scmp.ne.s32.totalorder %s1523_s7, %s1318_s21  ;;  %p1322_p4 = scmp.lt.u32.totalorder %s1318_s21, %s1523_s7 }
 0x412   :  { %p1324_p5 = pnand %p1322_p4, %p1319_p3 }
 0x414   :  { %1327 = shalt.err (!%p1324_p5)
}
 0x415   :  { %900 = dma.vmem_to_hbm [thread:$0]  %s895_s6, 2048, %s1523_s7, [#allocation12], %s1345_s12, %s1345_s12, %s1346_s15  }
 0x416   :  { %1334 = dma.done.wait [#allocation4], 2048  }
 0x417   :  { %1335 = vsyncadd [#allocation4], 4294965248 }
 0x418   :  { %1336 = dma.done.wait [#allocation12], 2048  }
 0x419   :  { %1337 = vsyncadd [#allocation12], 4294965248 }
 0x41a   :  { %907 = vsyncpa [#allocation3], 1 }
 0x41b   :  { %908 = vsyncpa [#allocation6], 1 }
 0x41c   :  { %909 = vsyncpa [#allocation9], 1 }
 0x41d   :  { %910 = vsyncpa [#allocation4], 1 }
 0x41e   :  { %911 = vsyncpa [#allocation12], 1 }

</bundles_post_ra>
